<compile_context>
chip_gen: v5e
topology: v5e:2x2
jax: 0.10.0
libtpu: 0.0.40
codegen_flags: <defaults>
</compile_context>

<pallas_src>
import jax
import jax.numpy as jnp
from jax.experimental import pallas as pl
from jax.experimental.pallas import tpu as pltpu

_LANE = 128


def _round_up(x, m):
    return (x + m - 1) // m * m


def _pad2d(a, rows, cols):
    r, c = a.shape
    if r == rows and c == cols:
        return a
    return jnp.pad(a, ((0, rows - r), (0, cols - c)))


def _vmem_capacity_bytes():
    try:
        return int(pltpu.get_tpu_info().vmem_capacity_bytes)
    except Exception:
        return 64 << 20  # conservative (v7x per-TensorCore VMEM)


def _largest_tile_i(Ip, target):
    """Largest 128-multiple that divides Ip and is <= max(target, 128)."""
    best = _LANE
    d = _LANE
    limit = min(Ip, max(target, _LANE))
    while d <= limit:
        if Ip % d == 0:
            best = d
        d += _LANE
    return best


# ---------------------------------------------------------------------------
# Kernels
# ---------------------------------------------------------------------------

def _mlp_kernel_acc(x_ref, guw_ref, gub_ref, dw_ref, db_ref, o_ref, acc_ref):
    """Grid (token tile t, intermediate tile i); i is the down-proj reduction."""
    i = pl.program_id(1)
    ti = dw_ref.shape[0]  # static tile_i

    x = x_ref[...]
    # Fused gate|up projection for this intermediate tile: one DMA, one matmul.
    gu = jnp.dot(x, guw_ref[...], preferred_element_type=jnp.float32) + gub_ref[...]
    gate = gu[:, :ti]
    up = gu[:, ti:]

    # SiLU(gate) * up  (sigmoid -> EUP slot, multiplies -> VALU)
    hidden = gate * jax.nn.sigmoid(gate) * up

    partial = jnp.dot(hidden.astype(dw_ref.dtype), dw_ref[...],
                      preferred_element_type=jnp.float32)

    @pl.when(i == 0)
    def _first():
        acc_ref[...] = partial          # no zero-init pass

    @pl.when(i > 0)
    def _accumulate():
        acc_ref[...] += partial

    @pl.when(i == pl.num_programs(1) - 1)
    def _finalize():
        o_ref[...] = (acc_ref[...] + db_ref[...]).astype(o_ref.dtype)


def _mlp_kernel_simple(x_ref, guw_ref, gub_ref, dw_ref, db_ref, o_ref):
    """n_i == 1 fast path: no accumulator scratch, write output directly."""
    ti = dw_ref.shape[0]
    x = x_ref[...]
    gu = jnp.dot(x, guw_ref[...], preferred_element_type=jnp.float32) + gub_ref[...]
    gate = gu[:, :ti]
    up = gu[:, ti:]
    hidden = gate * jax.nn.sigmoid(gate) * up
    out = jnp.dot(hidden.astype(dw_ref.dtype), dw_ref[...],
                  preferred_element_type=jnp.float32) + db_ref[...]
    o_ref[...] = out.astype(o_ref.dtype)


# ---------------------------------------------------------------------------
# Parameter preparation (call ONCE at parameter-load time, not per forward)
# ---------------------------------------------------------------------------

def prepare_mlp_params(gate_w, gate_b, up_w, up_b, down_w, down_b, *, tile_i=None):
    """Pad weights to lane multiples and fuse gate|up per intermediate tile.

    Weights are [in, out] (i.e. already transposed from nn.Linear's [out, in]).
    """
    H, I = gate_w.shape
    Hp = _round_up(H, _LANE)
    Ip = _round_up(I, _LANE)

    cap = _vmem_capacity_bytes()
    tgt_i = 2048 if cap >= (96 << 20) else 1024
    if tile_i is None:
        tile_i = _largest_tile_i(Ip, tgt_i)
    else:
        tile_i = _round_up(tile_i, _LANE)
        if Ip % tile_i != 0:
            Ip = _round_up(Ip, tile_i)
    n_i = Ip // tile_i

    gw = _pad2d(gate_w, Hp, Ip)
    uw = _pad2d(up_w, Hp, Ip)
    gb = _pad2d(gate_b.reshape(1, -1), 1, Ip)
    ub = _pad2d(up_b.reshape(1, -1), 1, Ip)

    # Per-tile fusion: block i of the fused weight is [gate_tile_i | up_tile_i].
    guw = jnp.concatenate(
        [gw.reshape(Hp, n_i, 1, tile_i), uw.reshape(Hp, n_i, 1, tile_i)],
        axis=2).reshape(Hp, n_i * 2 * tile_i)
    gub = jnp.concatenate(
        [gb.reshape(1, n_i, 1, tile_i), ub.reshape(1, n_i, 1, tile_i)],
        axis=2).reshape(1, n_i * 2 * tile_i)

    dw = _pad2d(down_w, Ip, Hp)
    db = _pad2d(down_b.reshape(1, -1), 1, Hp)

    return dict(guw=guw, gub=gub, dw=dw, db=db,
                H=H, I=I, Hp=Hp, Ip=Ip, tile_i=tile_i, n_i=n_i)


# ---------------------------------------------------------------------------
# Forward
# ---------------------------------------------------------------------------

def mlp_forward(x2d, params, *, tile_t=None):
    """x2d: (T, H) activations; params: output of prepare_mlp_params."""
    T, H = x2d.shape
    assert H == params["H"], "hidden-size mismatch"
    Hp, Ip = params["Hp"], params["Ip"]
    tile_i, n_i = params["tile_i"], params["n_i"]

    dtype = x2d.dtype
    a_item = jnp.dtype(dtype).itemsize
    w_item = jnp.dtype(params["guw"].dtype).itemsize
    sublane = max(8, 32 // a_item)

    cap = _vmem_capacity_bytes()
    budget = max(cap - (8 << 20), 16 << 20)

    # Token tiling: large tiles raise arithmetic intensity on the weight stream.
    if tile_t is None:
        tile_t = 512 if cap >= (96 << 20) else 384
    tile_t = max(sublane, _round_up(tile_t, sublane))
    Tsub = _round_up(max(T, 1), sublane)
    tile_t = min(tile_t, Tsub)
    # Keep >= 2 token tiles when tokens permit, so megacore parts (v7x) can
    # shard the "parallel" axis across both TensorCores.
    if Tsub > sublane and -(-Tsub // tile_t) < 2:
        tile_t = _round_up(-(-Tsub // 2), sublane)

    # Rough VMEM footprint: double-buffered blocks + (optional) f32 accumulator.
    def _need(tt):
        return (2 * 2 * tt * Hp * a_item                 # x + out tiles
                + 2 * Hp * 2 * tile_i * w_item           # fused gate|up weight
                + 2 * 2 * tile_i * w_item                # fused gate|up bias
                + 2 * tile_i * Hp * w_item               # down weight
                + 2 * Hp * w_item                        # down bias
                + (tt * Hp * 4 if n_i > 1 else 0))       # f32 accumulator

    while _need(tile_t) > budget and tile_t > sublane:
        tile_t = max(sublane, _round_up(tile_t // 2, sublane))

    Tp = _round_up(max(T, 1), tile_t)
    n_t = Tp // tile_t
    xp = _pad2d(x2d, Tp, Hp)

    vmem_limit = int(max(min(_need(tile_t) + (4 << 20), budget), 16 << 20))

    cost = pl.CostEstimate(
        flops=6 * Tp * Hp * Ip,                  # 3 matmuls, 2*T*H*I each
        transcendentals=Tp * Ip,                 # sigmoid
        bytes_accessed=int(2 * Tp * Hp * a_item  # x read + out write
                           + n_t * (3 * Hp * Ip + 2 * Ip + Hp) * w_item),
    )

    if n_i == 1:
        grid = (n_t,)
        in_specs = [
            pl.BlockSpec((tile_t, Hp), lambda t: (t, 0)),          # x tile
            pl.BlockSpec((Hp, 2 * tile_i), lambda t: (0, 0)),      # gate|up W
            pl.BlockSpec((1, 2 * tile_i), lambda t: (0, 0)),       # gate|up b
            pl.BlockSpec((tile_i, Hp), lambda t: (0, 0)),          # down W
            pl.BlockSpec((1, Hp), lambda t: (0, 0)),               # down b
        ]
        out_specs = pl.BlockSpec((tile_t, Hp), lambda t: (t, 0))
        kernel = _mlp_kernel_simple
        scratch = []
        dims = ("parallel",)
    else:
        grid = (n_t, n_i)
        in_specs = [
            pl.BlockSpec((tile_t, Hp), lambda t, i: (t, 0)),       # x tile
            pl.BlockSpec((Hp, 2 * tile_i), lambda t, i: (0, i)),   # gate|up W
            pl.BlockSpec((1, 2 * tile_i), lambda t, i: (0, i)),    # gate|up b
            pl.BlockSpec((tile_i, Hp), lambda t, i: (i, 0)),       # down W
            pl.BlockSpec((1, Hp), lambda t, i: (0, 0)),            # down b
        ]
        out_specs = pl.BlockSpec((tile_t, Hp), lambda t, i: (t, 0))
        kernel = _mlp_kernel_acc
        scratch = [pltpu.VMEM((tile_t, Hp), jnp.float32)]
        dims = ("parallel", "arbitrary")

    outp = pl.pallas_call(
        kernel,
        out_shape=jax.ShapeDtypeStruct((Tp, Hp), dtype),
        grid_spec=pltpu.PrefetchScalarGridSpec(
            num_scalar_prefetch=0,
            grid=grid,
            in_specs=in_specs,
            out_specs=out_specs,
            scratch_shapes=scratch),
        compiler_params=pltpu.CompilerParams(
            dimension_semantics=dims,
            vmem_limit_bytes=vmem_limit),
        cost_estimate=cost,
    )(xp, params["guw"], params["gub"], params["dw"], params["db"])

    if Tp == T and Hp == H:
        return outp
    return outp[:T, :H]


def mlp_ref(x2d, gate_w, gate_b, up_w, up_b, down_w, down_b):
    g = x2d @ gate_w + gate_b.reshape(1, -1)
    u = x2d @ up_w + up_b.reshape(1, -1)
    h = (g * jax.nn.sigmoid(g)) * u
    return h @ down_w + down_b.reshape(1, -1)


if __name__ == "__main__":
    key = jax.random.PRNGKey(0)

    # --- Toy shapes matching the module config (n_i == 1 fast path) -------
    batch, seq, hidden, inter = 2, 8, 32, 64
    ks = jax.random.split(key, 7)
    x = jax.random.normal(ks[0], (batch, seq, hidden), jnp.float32)
    gate_w = jax.random.normal(ks[1], (hidden, inter), jnp.float32) * 0.05
    gate_b = jax.random.normal(ks[2], (inter,), jnp.float32) * 0.05
    up_w = jax.random.normal(ks[3], (hidden, inter), jnp.float32) * 0.05
    up_b = jax.random.normal(ks[4], (inter,), jnp.float32) * 0.05
    down_w = jax.random.normal(ks[5], (inter, hidden), jnp.float32) * 0.05
    down_b = jax.random.normal(ks[6], (hidden,), jnp.float32) * 0.05

    params = prepare_mlp_params(gate_w, gate_b, up_w, up_b, down_w, down_b)
    x2d = x.reshape(batch * seq, hidden)
    out = mlp_forward(x2d, params).reshape(batch, seq, hidden)
    jax.block_until_ready(out)
    ref = mlp_ref(x2d, gate_w, gate_b, up_w, up_b,
                  down_w, down_b).reshape(batch, seq, hidden)
    assert jnp.allclose(out, ref, atol=2e-3, rtol=2e-3), "toy-shape mismatch"

    # --- Medium f32 test exercising the (n_t > 1, n_i > 1) accumulator path
    T2, H2, I2 = 384, 256, 768
    k2 = jax.random.split(jax.random.PRNGKey(1), 7)
    x2 = jax.random.normal(k2[0], (T2, H2), jnp.float32)
    gw2 = jax.random.normal(k2[1], (H2, I2), jnp.float32) * 0.05
    gb2 = jax.random.normal(k2[2], (I2,), jnp.float32) * 0.05
    uw2 = jax.random.normal(k2[3], (H2, I2), jnp.float32) * 0.05
    ub2 = jax.random.normal(k2[4], (I2,), jnp.float32) * 0.05
    dw2 = jax.random.normal(k2[5], (I2, H2), jnp.float32) * 0.05
    db2 = jax.random.normal(k2[6], (H2,), jnp.float32) * 0.05

    p2 = prepare_mlp_params(gw2, gb2, uw2, ub2, dw2, db2, tile_i=256)
    out2 = mlp_forward(x2, p2, tile_t=128)
    jax.block_until_ready(out2)
    ref2 = mlp_ref(x2, gw2, gb2, uw2, ub2, dw2, db2)
    assert jnp.allclose(out2, ref2, atol=2e-2, rtol=2e-2), "tiled-path mismatch"

    # --- bf16 activations/weights, f32 accumulation ------------------------
    bf = jnp.bfloat16
    x3 = x2.astype(bf)
    p3 = prepare_mlp_params(gw2.astype(bf), gb2.astype(bf), uw2.astype(bf),
                            ub2.astype(bf), dw2.astype(bf), db2.astype(bf),
                            tile_i=256)
    out3 = mlp_forward(x3, p3, tile_t=128)
    jax.block_until_ready(out3)
    f32 = jnp.float32
    ref3 = mlp_ref(x3.astype(f32),
                   gw2.astype(bf).astype(f32), gb2.astype(bf).astype(f32),
                   uw2.astype(bf).astype(f32), ub2.astype(bf).astype(f32),
                   dw2.astype(bf).astype(f32), db2.astype(bf).astype(f32))
    assert jnp.allclose(out3.astype(f32), ref3, atol=5e-2, rtol=5e-2), \
        "bf16-path mismatch"

    print("KERNEL_OK")
</pallas_src>

<mosaic_0001>
module attributes {stable_mosaic.version = 11 : i64} {
  func.func @_mlp_kernel_simple(%arg0: i32, %arg1: memref<8x128xf32, #tpu.memory_space<vmem>>, %arg2: memref<128x256xf32, #tpu.memory_space<vmem>>, %arg3: memref<1x256xf32, #tpu.memory_space<vmem>>, %arg4: memref<128x128xf32, #tpu.memory_space<vmem>>, %arg5: memref<1x128xf32, #tpu.memory_space<vmem>>, %arg6: memref<8x128xf32, #tpu.memory_space<vmem>>) attributes {dimension_semantics = [#tpu.dimension_semantics<parallel>], iteration_bounds = array<i64: 2>, scalar_prefetch = 0 : i64, scratch_operands = 0 : i64, tpu.core_type = #tpu.core_type<tc>, window_params = [{transform_indices = @transform_0, window_bounds = array<i64: 8, 128>}, {pipeline_mode = #tpu.pipeline_mode<synchronous>, transform_indices = @transform_1, window_bounds = array<i64: 128, 256>}, {pipeline_mode = #tpu.pipeline_mode<synchronous>, transform_indices = @transform_2, window_bounds = array<i64: 1, 256>}, {pipeline_mode = #tpu.pipeline_mode<synchronous>, transform_indices = @transform_3, window_bounds = array<i64: 128, 128>}, {pipeline_mode = #tpu.pipeline_mode<synchronous>, transform_indices = @transform_4, window_bounds = array<i64: 1, 128>}, {transform_indices = @transform_5, window_bounds = array<i64: 8, 128>}]} {
    %c0 = arith.constant 0 : index
    %c0_0 = arith.constant 0 : index
    %0 = vector.load %arg1[%c0, %c0_0] : memref<8x128xf32, #tpu.memory_space<vmem>>, vector<8x128xf32>
    %c0_1 = arith.constant 0 : index
    %c0_2 = arith.constant 0 : index
    %1 = vector.load %arg2[%c0_1, %c0_2] : memref<128x256xf32, #tpu.memory_space<vmem>>, vector<128x256xf32>
    %cst = arith.constant dense<0.000000e+00> : vector<8x256xf32>
    %2 = tpu.matmul %0, %1, %cst {dimension_numbers = #tpu.dot_dimension_numbers<[1], [0], [0], [1], [0, 0, 1, 1], [], []>} : vector<8x128xf32>, vector<128x256xf32>, vector<8x256xf32> -> vector<8x256xf32>
    %c0_3 = arith.constant 0 : index
    %c0_4 = arith.constant 0 : index
    %3 = vector.load %arg3[%c0_3, %c0_4] : memref<1x256xf32, #tpu.memory_space<vmem>>, vector<1x256xf32>
    %4 = vector.broadcast %3 : vector<1x256xf32> to vector<8x256xf32>
    %5 = arith.addf %2, %4 : vector<8x256xf32>
    %6 = vector.extract_strided_slice %5 {offsets = [0, 0], sizes = [8, 128], strides = [1, 1]} : vector<8x256xf32> to vector<8x128xf32>
    %7 = vector.extract_strided_slice %5 {offsets = [0, 128], sizes = [8, 128], strides = [1, 1]} : vector<8x256xf32> to vector<8x128xf32>
    %8 = arith.negf %6 : vector<8x128xf32>
    %9 = math.exp %8 : vector<8x128xf32>
    %cst_5 = arith.constant 1.000000e+00 : f32
    %10 = vector.broadcast %cst_5 : f32 to vector<8x128xf32>
    %11 = arith.addf %10, %9 : vector<8x128xf32>
    %12 = arith.divf %10, %11 : vector<8x128xf32>
    %13 = arith.mulf %6, %12 : vector<8x128xf32>
    %14 = arith.mulf %13, %7 : vector<8x128xf32>
    %c0_6 = arith.constant 0 : index
    %c0_7 = arith.constant 0 : index
    %15 = vector.load %arg4[%c0_6, %c0_7] : memref<128x128xf32, #tpu.memory_space<vmem>>, vector<128x128xf32>
    %cst_8 = arith.constant dense<0.000000e+00> : vector<8x128xf32>
    %16 = tpu.matmul %14, %15, %cst_8 {dimension_numbers = #tpu.dot_dimension_numbers<[1], [0], [0], [1], [0, 0, 1, 1], [], []>} : vector<8x128xf32>, vector<128x128xf32>, vector<8x128xf32> -> vector<8x128xf32>
    %c0_9 = arith.constant 0 : index
    %c0_10 = arith.constant 0 : index
    %17 = vector.load %arg5[%c0_9, %c0_10] : memref<1x128xf32, #tpu.memory_space<vmem>>, vector<1x128xf32>
    %18 = vector.broadcast %17 : vector<1x128xf32> to vector<8x128xf32>
    %19 = arith.addf %16, %18 : vector<8x128xf32>
    %c0_11 = arith.constant 0 : index
    %c0_12 = arith.constant 0 : index
    %20 = vector.load %arg6[%c0_11, %c0_12] : memref<8x128xf32, #tpu.memory_space<vmem>>, vector<8x128xf32>
    tpu.vector_store %arg6[%c0_11, %c0_12], %19 {strides = array<i32>} : memref<8x128xf32, #tpu.memory_space<vmem>>, vector<8x128xf32>,
    return
  }
  func.func @transform_0(%arg0: i32) -> (i32, i32) {
    %c0_i32 = arith.constant 0 : i32
    %c0_i32_0 = arith.constant 0 : i32
    return %arg0, %c0_i32 : i32, i32
  }
  func.func @transform_1(%arg0: i32) -> (i32, i32) {
    %c0_i32 = arith.constant 0 : i32
    %c0_i32_0 = arith.constant 0 : i32
    %c0_i32_1 = arith.constant 0 : i32
    return %c0_i32, %c0_i32_0 : i32, i32
  }
  func.func @transform_2(%arg0: i32) -> (i32, i32) {
    %c0_i32 = arith.constant 0 : i32
    %c0_i32_0 = arith.constant 0 : i32
    %c0_i32_1 = arith.constant 0 : i32
    return %c0_i32, %c0_i32_0 : i32, i32
  }
  func.func @transform_3(%arg0: i32) -> (i32, i32) {
    %c0_i32 = arith.constant 0 : i32
    %c0_i32_0 = arith.constant 0 : i32
    %c0_i32_1 = arith.constant 0 : i32
    return %c0_i32, %c0_i32_0 : i32, i32
  }
  func.func @transform_4(%arg0: i32) -> (i32, i32) {
    %c0_i32 = arith.constant 0 : i32
    %c0_i32_0 = arith.constant 0 : i32
    %c0_i32_1 = arith.constant 0 : i32
    return %c0_i32, %c0_i32_0 : i32, i32
  }
  func.func @transform_5(%arg0: i32) -> (i32, i32) {
    %c0_i32 = arith.constant 0 : i32
    %c0_i32_0 = arith.constant 0 : i32
    return %arg0, %c0_i32 : i32, i32
  }
}

</mosaic_0001>

<bundles_post_ra>
// kernel: tpu_custom_call.1
= control target key start
LH: loop header
LB: loop body
LE: loop exit
PB: predicated region body
PF: predicated region fallthrough
CT: control target
= control target key end

     0   :  { %10 = vsyncpa [#allocation3], 0  ;;  %s1050_s0 = inlined_call_operand.hbm [shape: f32[16,128], index: 0, kind: input, shape index: {}]   ;;  %s1051_s1 = inlined_call_operand.hbm [shape: f32[128,256], index: 1, kind: input, shape index: {}]   ;;  %s1052_s2 = inlined_call_operand.hbm [shape: f32[1,256], index: 2, kind: input, shape index: {}]   ;;  %s1053_s3 = inlined_call_operand.hbm [shape: f32[128,128], index: 3, kind: input, shape index: {}]   ;;  %s1054_s4 = inlined_call_operand.vmem [shape: f32[1,128], index: 4, kind: input, shape index: {}]   ;;  %s1055_s5 = inlined_call_operand.hbm [shape: f32[16,128], index: 5, kind: output, shape index: {}]  }
   0x1   :  { %12 = vsyncpa [#allocation3 + $0x1], 0 }
   0x2   :  { %13 = vsyncpa [#allocation6], 0 }
   0x3   :  { %14 = vsyncpa [#allocation9], 0 }
   0x4   :  { %15 = vsyncpa [#allocation4], 0 }
   0x5   :  { %17 = vsyncpa [#allocation4 + $0x1], 0  ;;  %s884_s18 = smov 0   ;;  %s886_s19 = smov 0  }
   0x6   :  { %s888_s20 = smov 0   ;;  %s890_s21 = smov 0  }
   0x7 LB: > { %s175_s24 = sshll.u32 %s1051_s1, 4  ;;  %s908_s25 = sadd.s32 4294967295, %s845_s21   ;;  %s845_s21 = sphi %s890_s21, %s1066_s21   ;;  %s841_s20 = sphi %s888_s20, %s1065_s20   ;;  %s837_s19 = sphi %s886_s19, %s1064_s19   ;;  %s833_s18 = sphi %s884_s18, %s1063_s18   ;;  %s176_s24 = int_to_ptr.hbm [resolvable:$true] %s175_s24 }
   0x8   : > { %p547_p0 = scmp.ge.s32.totalorder %s845_s21, 1  ;;  %p44_p1 = scmp.eq.s32.totalorder %s908_s25, 0 }
   0x9   : > { %p164_p2 = scmp.lt.s32.totalorder %s845_s21, 3  ;;  %s847_s27 = smov [#allocation5]  }
   0xa   : > { %s177_s28 = sshll.u32 %s847_s27, 4  ;;  %s190_s6 = sshll.u32 %s1052_s2, 4  ;;  %s178_s28 = int_to_ptr.vmem [resolvable:$true] %s177_s28  ;;  %s191_s6 = int_to_ptr.hbm [resolvable:$true] %s190_s6 }
   0xb   : > { %p913_p3 = pnand %p547_p0, %p164_p2  ;;  %s201_s10 = sshll.u32 %s1053_s3, 4  ;;  %s202_s10 = int_to_ptr.hbm [resolvable:$true] %s201_s10 }
   0xc   : > { %s848_s11 = smov [#allocation7]   ;;  %s849_s13 = smov 256  }
   0xd   : > { %p581_p4 = pneg %p913_p3  ;;  %s192_s12 = sshll.u32 %s848_s11, 4  ;;  %s193_s12 = int_to_ptr.vmem [resolvable:$true] %s192_s12 }
   0xe   : > { %s850_s14 = smov 16   ;;  %s851_s15 = smov [#allocation8]  }
   0xf   : > { %p925_p6 = pnand %p581_p4, %p44_p1  ;;  %s203_s16 = sshll.u32 %s851_s15, 4  ;;  %s204_s16 = int_to_ptr.vmem [resolvable:$true] %s203_s16 }
  0x10   : > { %s852_s17 = smov 128   ;;  %s853_s22 = smov 8  }
  0x11   : > { %584 = dma.hbm_to_vmem [thread:$0]  (!%p925_p6), %s176_s24, 4096, %s178_s28, [#allocation6], %s849_s13, %s849_s13, %s850_s14  }
  0x12   : > { %587 = dma.hbm_to_vmem [thread:$0]  (!%p925_p6), %s191_s6, 32, %s193_s12, [#allocation6]  }
  0x13   : > { %590 = dma.hbm_to_vmem [thread:$0]  (!%p925_p6), %s202_s10, 2048, %s204_s16, [#allocation9], %s852_s17, %s852_s17, %s853_s22  }
  0x14   : > { %s546_s23 = sadd.s32 4294967294, %s845_s21   ;;  %s940_s24 = sadd.s32 1, %s845_s21  }
  0x15   : > { %s30_s27 = sadd.s32 1, %s841_s20  ;;  %s27_s28 = ssub.s32 %s845_s21, %s940_s24 }
  0x16   : > { %p37_p7 = scmp.ne.s32.totalorder %s841_s20, %s837_s19  ;;  %p28_p8 = scmp.eq.s32.totalorder %s27_s28, 0 }
  0x17   : > { %p38_p9 = scmp.eq.s32.totalorder %s845_s21, 0  ;;  %p43_p10 = scmp.ne.s32.totalorder %s837_s19, %s833_s18 }
  0x18   : > { %p151_p11 = scmp.eq.s32.totalorder %s908_s25, 1  ;;  %p157_p0 = scmp.eq.s32.totalorder %s546_s23, 1 }
  0x19   : > { %s952_s29 = scalar_select %p28_p8, %s841_s20, %s30_s27  }
  0x1a   : > { %p956_p12 = por %p44_p1, %p43_p10  ;;  %p960_p13 = por %p151_p11, %p37_p7 }
  0x1b   : > { %p39_p2 = por %p38_p9, %p37_p7  ;;  %s220_s7 = sand.u32 1, %s841_s20  }
  0x1c   : > { %p965_p4 = por %p157_p0, %p43_p10  ;;  %p602_p6 = scmp.lt.s32.totalorder %s845_s21, 2 }
  0x1d   : > { %s552_s9 = sshll.u32 %s220_s7, 3  ;;  %s553_s10 = sshll.u32 %s845_s21, 3 }
  0x1e   : > { %s228_s13 = scalar_lea.hbm %s1050_s0, %s553_s10  ;;  %s224_s15 = scalar_lea.vmem [#allocation2], %s552_s9 }
  0x1f   : > { %s230_s14 = sshll.u32 %s228_s13, 4  ;;  %s232_s16 = sshll.u32 %s224_s15, 4  ;;  %s231_s14 = int_to_ptr.hbm [resolvable:$true] %s230_s14  ;;  %s233_s16 = int_to_ptr.vmem [resolvable:$true] %s232_s16 }
  0x20   : > { %p974_p8 = pnand %p602_p6, %p39_p2  ;;  %s221_s22 = scalar_lea.sflag [#allocation3], %s220_s7 }
  0x21   : > { %s741_s23 = sshra.s32 %s231_s14, 4  ;;  %s748_s9 = scalar_lea.hbm %s1050_s0, 16  ;;  %s742_s23 = int_to_ptr.hbm [resolvable:$true] %s741_s23 }
  0x22   : > { %s743_s27 = scalar_lea.hbm %s742_s23, 8  ;;  %p745_p9 = pneg %p974_p8 }
  0x23   : > { %p744_p7 = scmp.ne.s32.totalorder %s742_s23, %s743_s27  ;;  %p749_p0 = scmp.lt.s32.totalorder %s742_s23, %s1050_s0 }
  0x24   : > { %p750_p2 = scmp.lt.s32.totalorder %s748_s9, %s743_s27 }
  0x25   : > { %p746_p10 = pnand %p745_p9, %p744_p7 }
  0x26   : > { %p751_p6 = por %p750_p2, %p749_p0 }
  0x27   : > { %p747_p11 = pneg %p746_p10 }
  0x29   : > { %p752_p5 = pnand %p751_p6, %p747_p11 }
  0x2b   : > { %755 = shalt.err (!%p752_p5)
}
  0x2c   : > { %594 = dma.hbm_to_vmem [thread:$0]  (!%p974_p8), %s231_s14, 128, %s233_s16, %s221_s22  }
  0x2d   : > { %241 = sbr.rel (%p913_p3) target bundleno = 384 (0x180), region = 40  ;;  %s991_s7 = sand.u32 (!%p913_p3), 1, %s837_s19  }
  0x2e   : > { %s555_s13 = sshll.u32 (!%p913_p3), %s991_s7, 3  ;;  %s244_s15 = scalar_lea.sflag (!%p913_p3), [#allocation3], %s991_s7 }
  0x2f   : > { %s997_s23 = scalar_lea.vmem (!%p913_p3), [#allocation2], %s555_s13 }
  0x32   : > { %816 = dma.done.wait (%p956_p12), %s244_s15, 128  }
  0x33   : > { %818 = vsyncadd (%p956_p12), %s244_s15, 4294967168 }
  0x34   : > { %820 = dma.done.wait (%p44_p1), [#allocation6], 4128  }
  0x35   : > { %822 = vsyncadd (%p44_p1), [#allocation6], 4294963168 }
  0x36   : > { %824 = dma.done.wait (%p44_p1), [#allocation9], 2048  }
  0x37   : > { %826 = vsyncadd (%p44_p1), [#allocation9], 4294965248  ;;  %v321_v0 = vld [vmem:[#allocation5 + $0xf0] sm:$0xff]  ;;  %v319_v1 = vld [vmem:[#allocation5 + $0xe0] sm:$0xff]  ;;  %s562_s26 = sshll.u32 %s908_s25, 3  ;;  %s289_s27 = scalar_lea.vmem [#allocation10], %s555_s13 }
  0x38   : > { %329 = vmatpush.msra.mxu0 %v321_v0  ;;  %v317_v2 = vld [vmem:[#allocation5 + $0xd0] sm:$0xff]  ;;  %v315_v3 = vld [vmem:[#allocation5 + $0xc0] sm:$0xff]  ;;  %v322_v4 = vld [vmem:[#allocation5 + $0xf8] sm:$0xff]  ;;  %s442_s16 = scalar_lea.hbm %s1055_s5, %s562_s26  ;;  %s444_s28 = sshll.u32 %s289_s27, 4  ;;  %s445_s28 = int_to_ptr.vmem [resolvable:$true] %s444_s28 }
  0x39   : > { %v313_v5 = vld [vmem:[#allocation5 + $0xb0] sm:$0xff]  ;;  %349 = vmatpush.msra.mxu1 %v322_v4  ;;  %v320_v6 = vld [vmem:[#allocation5 + $0xe8] sm:$0xff]  ;;  %v318_v7 = vld [vmem:[#allocation5 + $0xd8] sm:$0xff]  ;;  %s446_s10 = sshll.u32 %s442_s16, 4  ;;  %s432_s9 = scalar_lea.sflag [#allocation4], %s991_s7  ;;  %s447_s10 = int_to_ptr.hbm [resolvable:$true] %s446_s10 }
  0x3a   : > { %330 = vmatpush.msra.mxu0 %v319_v1  ;;  %v311_v8 = vld [vmem:[#allocation5 + $0xa0] sm:$0xff]  ;;  %v316_v9 = vld [vmem:[#allocation5 + $0xc8] sm:$0xff]  ;;  %v309_v10 = vld [vmem:[#allocation5 + $0x90] sm:$0xff]  ;;  %s785_s25 = sshra.s32 %s447_s10, 4  ;;  %s786_s25 = int_to_ptr.hbm [resolvable:$true] %s785_s25 }
  0x3b   : > { %350 = vmatpush.msra.mxu1 %v320_v6  ;;  %v314_v11 = vld [vmem:[#allocation5 + $0xb8] sm:$0xff]  ;;  %v307_v12 = vld [vmem:[#allocation5 + $0x80] sm:$0xff]  ;;  %v312_v13 = vld [vmem:[#allocation5 + $0xa8] sm:$0xff]  ;;  %s787_s11 = scalar_lea.hbm %s786_s25, 8  ;;  %p792_p12 = scmp.lt.s32.totalorder %s786_s25, %s1055_s5 }
  0x3c   : > { %331 = vmatpush.msra.mxu0 %v317_v2  ;;  %v305_v14 = vld [vmem:[#allocation5 + $0x70] sm:$0xff]  ;;  %v310_v15 = vld [vmem:[#allocation5 + $0x98] sm:$0xff]  ;;  %v303_v16 = vld [vmem:[#allocation5 + $0x60] sm:$0xff]  ;;  %p788_p1 = scmp.ne.s32.totalorder %s786_s25, %s787_s11 }
  0x3d   : > { %351 = vmatpush.msra.mxu1 %v318_v7  ;;  %v308_v17 = vld [vmem:[#allocation5 + $0x88] sm:$0xff]  ;;  %v301_v18 = vld [vmem:[#allocation5 + $0x50] sm:$0xff]  ;;  %v306_v19 = vld [vmem:[#allocation5 + $0x78] sm:$0xff] }
  0x3e   : > { %332 = vmatpush.msra.mxu0 %v315_v3  ;;  %v299_v20 = vld [vmem:[#allocation5 + $0x40] sm:$0xff]  ;;  %v304_v21 = vld [vmem:[#allocation5 + $0x68] sm:$0xff]  ;;  %v297_v22 = vld [vmem:[#allocation5 + $0x30] sm:$0xff]  ;;  %p789_p3 = pnand %p788_p1, %p960_p13 }
  0x3f   : > { %352 = vmatpush.msra.mxu1 %v316_v9  ;;  %v302_v23 = vld [vmem:[#allocation5 + $0x58] sm:$0xff]  ;;  %v295_v24 = vld [vmem:[#allocation5 + $0x20] sm:$0xff]  ;;  %v300_v25 = vld [vmem:[#allocation5 + $0x48] sm:$0xff] }
  0x40   : > { %333 = vmatpush.msra.mxu0 %v313_v5  ;;  %v293_v26 = vld [vmem:[#allocation5 + $0x10] sm:$0xff]  ;;  %v298_v27 = vld [vmem:[#allocation5 + $0x38] sm:$0xff]  ;;  %v291_v28 = vld [vmem:[#allocation5] sm:$0xff]  ;;  %p790_p5 = pneg %p789_p3 }
  0x41   : > { %353 = vmatpush.msra.mxu1 %v314_v11  ;;  %v290_v29 = vld [vmem:[%s997_s23] sm:$0xff]  ;;  %v296_v30 = vld [vmem:[#allocation5 + $0x28] sm:$0xff]  ;;  %v323_v45 = vld [vmem:[#allocation7] sm:$0x3]  ;;  %s791_s23 = scalar_lea.hbm %s1055_s5, 16 }
  0x42   : > { %334 = vmatpush.msra.mxu0 %v311_v8  ;;  %v294_v31 = vld [vmem:[#allocation5 + $0x18] sm:$0xff]  ;;  %v292_v32 = vld [vmem:[#allocation5 + $0x8] sm:$0xff]  ;;  %v325_v47 = vperm.slane %v323_v45, 0  ;;  %v326_v62 = vperm.slane %v323_v45, 1  ;;  %v646_v7 = vld [vmem:[%s1054_s4] ss:$0 sm:$0xff]  ;;  %p793_p8 = scmp.lt.s32.totalorder %s791_s23, %s787_s11 }
  0x43   : > { %354 = vmatpush.msra.mxu1 %v312_v13  ;;  %v405_v33 = vld [vmem:[#allocation8 + $0x78] sm:$0xff]  ;;  %v404_v34 = vld [vmem:[#allocation8 + $0x70] sm:$0xff]  ;;  %v403_v35 = vld [vmem:[#allocation8 + $0x68] sm:$0xff] }
  0x44   : > { %335 = vmatpush.msra.mxu0 %v309_v10  ;;  %410 = vmatpush.msra.mxu2 %v405_v33  ;;  %v402_v36 = vld [vmem:[#allocation8 + $0x60] sm:$0xff]  ;;  %v401_v37 = vld [vmem:[#allocation8 + $0x58] sm:$0xff]  ;;  %v400_v38 = vld [vmem:[#allocation8 + $0x50] sm:$0xff]  ;;  %p794_p7 = por %p793_p8, %p792_p12 }
  0x45   : > { %355 = vmatpush.msra.mxu1 %v310_v15  ;;  %v399_v39 = vld [vmem:[#allocation8 + $0x48] sm:$0xff]  ;;  %v398_v40 = vld [vmem:[#allocation8 + $0x40] sm:$0xff]  ;;  %v397_v41 = vld [vmem:[#allocation8 + $0x38] sm:$0xff] }
  0x46   : > { %336 = vmatpush.msra.mxu0 %v307_v12  ;;  %411 = vmatpush.msra.mxu2 %v404_v34  ;;  %v396_v42 = vld [vmem:[#allocation8 + $0x30] sm:$0xff]  ;;  %v395_v43 = vld [vmem:[#allocation8 + $0x28] sm:$0xff]  ;;  %v394_v44 = vld [vmem:[#allocation8 + $0x20] sm:$0xff]  ;;  %p795_p9 = pnand %p794_p7, %p790_p5 }
  0x47   : > { %356 = vmatpush.msra.mxu1 %v308_v17  ;;  %v393_v46 = vld [vmem:[#allocation8 + $0x18] sm:$0xff]  ;;  %v392_v48 = vld [vmem:[#allocation8 + $0x10] sm:$0xff]  ;;  %v391_v49 = vld [vmem:[#allocation8 + $0x8] sm:$0xff] }
  0x48   : > { %337 = vmatpush.msra.mxu0 %v305_v14  ;;  %412 = vmatpush.msra.mxu2 %v403_v35  ;;  %v390_v50 = vld [vmem:[#allocation8] sm:$0xff] }
  0x49   : > { %357 = vmatpush.msra.mxu1 %v306_v19 }
  0x4a   : > { %338 = vmatpush.msra.mxu0 %v303_v16  ;;  %413 = vmatpush.msra.mxu2 %v402_v36 }
  0x4b   : > { %358 = vmatpush.msra.mxu1 %v304_v21 }
  0x4c   : > { %339 = vmatpush.msra.mxu0 %v301_v18  ;;  %414 = vmatpush.msra.mxu2 %v401_v37 }
  0x4d   : > { %359 = vmatpush.msra.mxu1 %v302_v23 }
  0x4e   : > { %340 = vmatpush.msra.mxu0 %v299_v20  ;;  %415 = vmatpush.msra.mxu2 %v400_v38 }
  0x4f   : > { %360 = vmatpush.msra.mxu1 %v300_v25 }
  0x50   : > { %341 = vmatpush.msra.mxu0 %v297_v22  ;;  %416 = vmatpush.msra.mxu2 %v399_v39 }
  0x51   : > { %361 = vmatpush.msra.mxu1 %v298_v27 }
  0x52   : > { %342 = vmatpush.msra.mxu0 %v295_v24  ;;  %417 = vmatpush.msra.mxu2 %v398_v40 }
  0x53   : > { %362 = vmatpush.msra.mxu1 %v296_v30 }
  0x54   : > { %343 = vmatpush.msra.mxu0 %v293_v26  ;;  %418 = vmatpush.msra.mxu2 %v397_v41 }
  0x55   : > { %363 = vmatpush.msra.mxu1 %v294_v31 }
  0x56   : > { %344 = vmatpush.msra.mxu0 %v291_v28  ;;  %419 = vmatpush.msra.mxu2 %v396_v42 }
  0x57   : > { %345 = vmatmul.f32.vlgmr.msra.gmra.mxu0 %v290_v29  ;;  %364 = vmatpush.msra.mxu1 %v292_v32 }
  0x58   : > { %365 = vmatmul.f32.vlgmr.msra.gmra.mxu1 %v290_v29  ;;  %420 = vmatpush.msra.mxu2 %v395_v43 }
  0x5a   : > { %421 = vmatpush.msra.mxu2 %v394_v44 }
  0x5c   : > { %422 = vmatpush.msra.mxu2 %v393_v46 }
  0x5e   : > { %423 = vmatpush.msra.mxu2 %v392_v48 }
  0x60   : > { %424 = vmatpush.msra.mxu2 %v391_v49 }
  0x62   : > { %425 = vmatpush.msra.mxu2 %v390_v50 }
  0xd4   : > { %v346_v51 = vpop.f32.mrf.mxu0 }
  0xd5   : > { %v347_v52 = vadd.f32 %v346_v51, %v325_v47  ;;  %v366_v63 = vpop.f32.mrf.mxu1 }
  0xd6   : > { %v367_v3 = vadd.f32 %v366_v63, %v326_v62 }
  0xd7   : > { %v560_v53 = vmul.f32 -1.442695, %v347_v52 }
  0xd9   : > { %647 = vpow2.f32 %v560_v53 }
  0xdf   : > { %v648_v54 = vpop.eup %647 }
  0xe0   : > { %v372_v55 = vadd.f32 1.0, %v648_v54 }
  0xe2   : > { %649 = vrcp.f32 %v372_v55  ;;  %v384_v59 = vand.u32 2147483648, %v372_v55  ;;  %v382_v61 = vand.u32 2147483647, %v372_v55  ;;  %vm378_vm1 = vweird.f32 %v372_v55 }
  0xe4   : > { %v385_v1 = vor.u32 1.1754944e-38, %v384_v59  ;;  %vm383_vm3 = vcmp.eq.f32.partialorder %v382_v61, 8.507059e+37 }
  0xe8   : > { %v650_v56 = vpop.eup %649 }
  0xe9   : > { %v374_v57 = vmul.f32 %v650_v56, %v372_v55  ;;  %vm379_vm0 = vweird.f32 %v650_v56 }
  0xea   : > { %vm380_vm2 = vmor %vm378_vm1, %vm379_vm0 }
  0xeb   : > { %v375_v58 = vsub.f32 1.0, %v374_v57 }
  0xed   : > { %v376_v60 = vmul.f32 %v650_v56, %v375_v58 }
  0xef   : > { %v377_v0 = vadd.f32 %v650_v56, %v376_v60 }
  0xf1   : > { %v381_v2 = vsel %vm380_vm2, %v650_v56, %v377_v0 }
  0xf2   : > { %v386_v4 = vsel %vm383_vm3, %v385_v1, %v381_v2 }
  0xf3   : > { %v388_v5 = vmul.f32 %v386_v4, %v347_v52 }
  0xf5   : > { %v389_v6 = vmul.f32 %v388_v5, %v367_v3 }
  0xf7   : > { %426 = vmatmul.f32.vlgmr.msra.gmra.mxu2 %v389_v6 }
 0x17a   : > { %v427_v8 = vpop.f32.mrf.mxu2 }
 0x17b   : > { %v428_v9 = vadd.f32 %v646_v7, %v427_v8 }
 0x17d   : > { %430 = vst [vmem:[%s289_s27] sm:$0xff] %v428_v9 }
 0x17e   : > { %798 = shalt.err (!%p795_p9)
}
 0x17f   : > { %579 = dma.vmem_to_hbm [thread:$0]  (%p960_p13), %s445_s28, 128, %s447_s10, %s432_s9  }
 0x180 PF: > { %s458_s7 = sand.u32 1, %s833_s18   ;;  %p1062_p10 = scmp.ge.s32.totalorder %s845_s21, 2 }
 0x181   : > { %s459_s30 = scalar_lea.sflag [#allocation4], %s458_s7 }
 0x182   : > { %p596_p11 = pnand %p1062_p10, %p965_p4 }
 0x184   : > { %p597_p0 = pneg %p596_p11 }
 0x186   : > { %828 = dma.done.wait (%p597_p0), %s459_s30, 128  }
 0x187   : > { %830 = vsyncadd (%p597_p0), %s459_s30, 4294967168  ;;  %p20_p2 = scmp.ge.s32.totalorder %s940_s24, 4   ;;  %s1063_s18 = smov %s837_s19 }
 0x188   : > { %s1064_s19 = smov %s841_s20  ;;  %s1065_s20 = smov %s952_s29 }
 0x189   : > { %s1066_s21 = smov %s940_s24  ;;  %22 = sbr.rel (!%p20_p2) target bundleno = 7 (0x7), region = 97 }
 0x18e   :  { %465 = vsyncpa [#allocation3], 1 }
 0x18f   :  { %467 = vsyncpa [#allocation3 + $0x1], 1 }
 0x190   :  { %468 = vsyncpa [#allocation6], 1 }
 0x191   :  { %469 = vsyncpa [#allocation9], 1 }
 0x192   :  { %470 = vsyncpa [#allocation4], 1 }
 0x193   :  { %472 = vsyncpa [#allocation4 + $0x1], 1 }

</bundles_post_ra>
